<compile_context>
chip_gen: v5e
topology: v5e:2x2
jax: 0.10.0
libtpu: 0.0.40
codegen_flags: <defaults>
</compile_context>

<pallas_src>
import numpy as np
import jax
import jax.numpy as jnp
from jax import lax
from jax.experimental import pallas as pl
from jax.experimental.pallas import tpu as pltpu


EDGE_LIST = [
    (1, 0), (2, 0), (2, 1), (3, 0), (3, 1), (3, 2), (4, 0), (5, 0), (6, 0),
    (6, 4), (6, 5), (7, 0), (7, 1), (7, 2), (7, 3), (8, 0), (8, 2), (9, 2),
    (10, 0), (10, 4), (10, 5), (11, 0), (12, 0), (12, 3), (13, 0), (13, 1),
    (13, 2), (13, 3), (16, 5), (16, 6), (17, 0), (17, 1), (19, 0), (19, 1),
    (21, 0), (21, 1), (25, 23), (25, 24), (27, 2), (27, 23), (27, 24),
    (28, 2), (29, 23), (29, 26), (30, 1), (30, 8), (31, 0), (31, 24),
    (31, 25), (31, 28), (32, 2), (32, 8), (32, 14), (32, 15), (32, 18),
    (32, 20), (32, 22), (32, 23), (32, 29), (32, 30), (32, 31), (33, 8),
    (33, 9), (33, 13), (33, 14), (33, 15), (33, 18), (33, 19), (33, 20),
    (33, 22), (33, 23), (33, 26), (33, 27), (33, 28), (33, 29), (33, 30),
    (33, 31), (33, 32),
]
NUM_NODES = 34


def build_adjacency(num_nodes=NUM_NODES, edge_list=EDGE_LIST):
    """A[dst, src] = (# directed edges src -> dst); edges are added both ways.

    Using += matches DGL's send/recv-sum semantics: a duplicated edge would
    deliver (and sum) two messages. The karate-club list has no duplicates.
    """
    a = np.zeros((num_nodes, num_nodes), dtype=np.float32)
    for src, dst in edge_list:
        a[dst, src] += 1.0   # edge src -> dst delivers msg to dst
        a[src, dst] += 1.0   # reverse edge dst -> src delivers msg to src
    return a


def gcn_layer_kernel(a_ref, x_ref, w_ref, b_ref, o_ref):
    """General path: h = A @ (X . W^T) + b.

    Both dots are single MXU passes at this size on every generation; the raw
    [out_feats, in_feats] weight is contracted over in_feats directly (no
    transpose materialized).
    """
    xw = lax.dot_general(
        x_ref[...], w_ref[...],
        dimension_numbers=(((1,), (1,)), ((), ())),
        preferred_element_type=jnp.float32)
    o_ref[...] = (
        jnp.dot(a_ref[...], xw, preferred_element_type=jnp.float32) + b_ref[...]
    )


def gcn_layer_identity_kernel(a_ref, w_ref, b_ref, o_ref):
    """Identity-features fast path (X == I): h = A @ W^T + b."""
    o_ref[...] = (
        lax.dot_general(
            a_ref[...], w_ref[...],
            dimension_numbers=(((1,), (1,)), ((), ())),
            preferred_element_type=jnp.float32)
        + b_ref[...]
    )


def gcn_layer(adj, x, weight, bias2d):
    """One GCNLayer forward.

    adj:    [N, N] dense adjacency (A[dst, src] = edge multiplicity)
    x:      [N, in_feats] node features, or None meaning X == I (skips one dot)
    weight: [out_feats, in_feats]  (raw nn.Linear layout, NOT transposed)
    bias2d: [1, out_feats]         (reshaped once at parameter-init time)
    returns [N, out_feats]
    """
    n = adj.shape[0]
    out_feats, in_feats = weight.shape

    compiler_params = pltpu.CompilerParams(
        # ~20 KiB footprint; don't reserve the multi-MiB default.
        vmem_limit_bytes=1 * 1024 * 1024,
    )
    out_shape = jax.ShapeDtypeStruct((n, out_feats), jnp.float32)
    out_spec = pl.BlockSpec((n, out_feats), lambda: (0, 0))
    adj_spec = pl.BlockSpec((n, n), lambda: (0, 0))
    w_spec = pl.BlockSpec((out_feats, in_feats), lambda: (0, 0))
    b_spec = pl.BlockSpec((1, out_feats), lambda: (0, 0))

    if x is None:
        # X == I: agg = A, so h = A @ W^T + b. One dot, one fewer DMA.
        flops = 2 * n * in_feats * out_feats + n * out_feats
        bytes_accessed = 4 * (n * n + out_feats * in_feats + out_feats
                              + n * out_feats)
        return pl.pallas_call(
            gcn_layer_identity_kernel,
            out_shape=out_shape,
            in_specs=[adj_spec, w_spec, b_spec],
            out_specs=out_spec,
            compiler_params=compiler_params,
            cost_estimate=pl.CostEstimate(
                flops=flops, transcendentals=0, bytes_accessed=bytes_accessed),
        )(adj, weight, bias2d)

    # General path.
    flops = (2 * n * in_feats * out_feats       # X . W^T
             + 2 * n * n * out_feats            # A @ (XW)
             + n * out_feats)                   # bias
    bytes_accessed = 4 * (n * n + n * in_feats + out_feats * in_feats
                          + out_feats + n * out_feats)
    return pl.pallas_call(
        gcn_layer_kernel,
        out_shape=out_shape,
        in_specs=[adj_spec,
                  pl.BlockSpec((n, in_feats), lambda: (0, 0)),
                  w_spec, b_spec],
        out_specs=out_spec,
        compiler_params=compiler_params,
        cost_estimate=pl.CostEstimate(
            flops=flops, transcendentals=0, bytes_accessed=bytes_accessed),
    )(adj, x, weight, bias2d)


if __name__ == "__main__":
    in_feats = NUM_NODES   # inputs = torch.eye(34)
    out_feats = 8

    # Deterministic parameter init (nn.Linear-style uniform(-1/sqrt(in), 1/sqrt(in)))
    key = jax.random.PRNGKey(0)
    kw, kb = jax.random.split(key)
    bound = 1.0 / np.sqrt(in_feats)
    weight = jax.random.uniform(kw, (out_feats, in_feats), jnp.float32, -bound, bound)
    bias = jax.random.uniform(kb, (out_feats,), jnp.float32, -bound, bound)
    # Shape the bias once, at parameter-init time, not per call.
    bias2d = bias.reshape(1, out_feats)

    adj = jnp.asarray(build_adjacency())
    x = jnp.eye(NUM_NODES, dtype=jnp.float32)

    # Identity-features fast path (matches the karate-club harness: X == I).
    out_fast = jax.block_until_ready(gcn_layer(adj, None, weight, bias2d))
    # General path (arbitrary node features).
    out_gen = jax.block_until_ready(gcn_layer(adj, x, weight, bias2d))

    # Reference check in plain JAX (original association).
    ref = (adj @ x) @ weight.T + bias
    np.testing.assert_allclose(np.asarray(out_fast), np.asarray(ref),
                               rtol=1e-5, atol=1e-5)
    np.testing.assert_allclose(np.asarray(out_gen), np.asarray(ref),
                               rtol=1e-5, atol=1e-5)

    print("KERNEL_OK")
</pallas_src>

<mosaic_0001>
module attributes {stable_mosaic.version = 11 : i64} {
  func.func @gcn_layer_identity_kernel(%arg0: memref<34x34xf32, #tpu.memory_space<vmem>>, %arg1: memref<8x34xf32, #tpu.memory_space<vmem>>, %arg2: memref<1x8xf32, #tpu.memory_space<vmem>>, %arg3: memref<34x8xf32, #tpu.memory_space<vmem>>) attributes {dimension_semantics = [], scalar_prefetch = 0 : i64, scratch_operands = 0 : i64, tpu.core_type = #tpu.core_type<tc>} {
    %c0 = arith.constant 0 : index
    %c0_0 = arith.constant 0 : index
    %0 = vector.load %arg0[%c0, %c0_0] : memref<34x34xf32, #tpu.memory_space<vmem>>, vector<34x34xf32>
    %c0_1 = arith.constant 0 : index
    %c0_2 = arith.constant 0 : index
    %1 = vector.load %arg1[%c0_1, %c0_2] : memref<8x34xf32, #tpu.memory_space<vmem>>, vector<8x34xf32>
    %cst = arith.constant dense<0.000000e+00> : vector<34x8xf32>
    %2 = tpu.matmul %0, %1, %cst {dimension_numbers = #tpu.dot_dimension_numbers<[1], [1], [0], [0], [0, 0, 1, 0], [], []>} : vector<34x34xf32>, vector<8x34xf32>, vector<34x8xf32> -> vector<34x8xf32>
    %c0_3 = arith.constant 0 : index
    %c0_4 = arith.constant 0 : index
    %3 = vector.load %arg2[%c0_3, %c0_4] : memref<1x8xf32, #tpu.memory_space<vmem>>, vector<1x8xf32>
    %4 = vector.broadcast %3 : vector<1x8xf32> to vector<34x8xf32>
    %5 = arith.addf %2, %4 : vector<34x8xf32>
    %c0_5 = arith.constant 0 : index
    %c0_6 = arith.constant 0 : index
    %6 = vector.load %arg3[%c0_5, %c0_6] : memref<34x8xf32, #tpu.memory_space<vmem>>, vector<34x8xf32>
    tpu.vector_store %arg3[%c0_5, %c0_6], %5 {strides = array<i32>} : memref<34x8xf32, #tpu.memory_space<vmem>>, vector<34x8xf32>,
    return
  }
}

</mosaic_0001>

<bundles_post_ra>
// kernel: tpu_custom_call.1
= control target key start
LH: loop header
LB: loop body
LE: loop exit
PB: predicated region body
PF: predicated region fallthrough
CT: control target
= control target key end

     0   :  { %8 = vsyncpa [#allocation3], 0  ;;  %s232_s0 = inlined_call_operand.hbm [shape: f32[34,34], index: 0, kind: input, shape index: {}]   ;;  %s233_s1 = inlined_call_operand.hbm [shape: f32[8,34], index: 1, kind: input, shape index: {}]   ;;  %s234_s2 = inlined_call_operand.vmem [shape: f32[1,8], index: 2, kind: input, shape index: {}]   ;;  %s235_s3 = inlined_call_operand.vmem [shape: f32[34,8], index: 3, kind: output, shape index: {}]  }
   0x1   :  { %s14_s14 = sshll.u32 %s232_s0, 4  ;;  %s15_s14 = int_to_ptr.hbm [resolvable:$true] %s14_s14 }
   0x2   :  { %9 = vsyncpa [#allocation5], 0  ;;  %s184_s15 = smov [#allocation2]   ;;  %s28_s19 = sshll.u32 %s233_s1, 4  ;;  %s29_s19 = int_to_ptr.hbm [resolvable:$true] %s28_s19 }
   0x3   :  { %s16_s16 = sshll.u32 %s184_s15, 4  ;;  %s185_s20 = smov 128   ;;  %s17_s16 = int_to_ptr.vmem [resolvable:$true] %s16_s16 }
   0x4   :  { %s186_s21 = smov 8   ;;  %s187_s22 = smov [#allocation4]  }
   0x5   :  { %22 = dma.hbm_to_vmem [thread:$0]  %s15_s14, 640, %s17_s16, [#allocation3], %s185_s20, %s185_s20, %s186_s21  }
   0x6   :  { %s30_s23 = sshll.u32 %s187_s22, 4  ;;  %s31_s23 = int_to_ptr.vmem [resolvable:$true] %s30_s23 }
   0x7   :  { %33 = dma.hbm_to_vmem [thread:$0]  %s29_s19, 128, %s31_s23, [#allocation5]  }
   0x8   :  { %180 = dma.done.wait [#allocation3], 640  }
   0x9   :  { %181 = vsyncadd [#allocation3], 4294966656 }
   0xa   :  { %182 = dma.done.wait [#allocation5], 128  }
   0xb   :  { %183 = vsyncadd [#allocation5], 4294967168  ;;  %vm54_vm0 = vcmask 277504   ;;  %v49_v0 = vld [vmem:[#allocation4] sm:$0xff]  ;;  %v46_v1 = vld [vmem:[#allocation2 + $0x10] sm:$0xff]  ;;  %vm105_vm1 = vcmask 64512  }
   0xc   :  { %125 = vmatpush.xpose.msk.msra.mxu2 %vm54_vm0, %v49_v0  ;;  %126 = vmatpush.xpose.msk.msra.mxu3 %vm54_vm0, %v49_v0  ;;  %v48_v2 = vld [vmem:[#allocation2 + $0x20] sm:$0x3]  ;;  %v45_v4 = vld [vmem:[#allocation2 + $0x8] sm:$0xff]  ;;  %v47_v5 = vld [vmem:[#allocation2 + $0x18] sm:$0xff]  ;;  %vm110_vm2 = vcmask 58368  }
   0xd   :  { %118 = vmatpush.xpose.msk.msra.mxu0 %vm54_vm0, %v49_v0  ;;  %124 = vmatpush.xpose.msk.msra.mxu1 %vm54_vm0, %v49_v0  ;;  %v44_v3 = vld [vmem:[#allocation2] sm:$0xff] }
   0xe   :  { %v131_v6 = vld [vmem:[%s234_s2] ss:$0 sm:$0xff] }
   0xf   :  { %121 = vmatmul.msk.f32.vlgmr.msra.gmra.mxu2 %vm54_vm0, %v46_v1  ;;  %123 = vmatmul.msk.f32.vlgmr.msra.gmra.mxu3 %vm54_vm0, %v48_v2 }
  0x10   :  { %119 = vmatmul.msk.f32.vlgmr.msra.gmra.mxu0 %vm54_vm0, %v44_v3  ;;  %120 = vmatmul.msk.f32.vlgmr.msra.gmra.mxu1 %vm54_vm0, %v45_v4 }
  0x17   :  { %122 = vmatmul.msk.f32.gmra.mxu2 %vm54_vm0, %v47_v5 }
  0x8d   :  { %v90_v7 = vpop.f32.mrf.mxu0  ;;  %v93_v8 = vpop.f32.mrf.mxu1 }
  0x8e   :  { %v91_v9 = vadd.f32 %v131_v6, %v90_v7  ;;  %v94_v10 = vadd.f32 %v131_v6, %v93_v8 }
  0x90   :  { %106 = vst.msk [vmem:[%s235_s3] sm:$0xff] %vm105_vm1, %v91_v9 }
  0x91   :  { %107 = vst.msk [vmem:[%s235_s3 + $0x8] sm:$0xff] %vm105_vm1, %v94_v10 }
  0x92   :  { %v96_v11 = vpop.f32.mrf.mxu2  ;;  %v102_v12 = vpop.f32.mrf.mxu3 }
  0x93   :  { %v97_v13 = vadd.f32 %v131_v6, %v96_v11  ;;  %v103_v14 = vadd.f32 %v131_v6, %v102_v12 }
  0x95   :  { %108 = vst.msk [vmem:[%s235_s3 + $0x10] sm:$0xff] %vm105_vm1, %v97_v13 }
  0x96   :  { %111 = vst.msk [vmem:[%s235_s3 + $0x20] sm:$0x3] %vm110_vm2, %v103_v14 }
  0x9a   :  { %v99_v15 = vpop.f32.mrf.mxu2 }
  0x9b   :  { %v100_v16 = vadd.f32 %v131_v6, %v99_v15 }
  0x9d   :  { %109 = vst.msk [vmem:[%s235_s3 + $0x18] sm:$0xff] %vm105_vm1, %v100_v16 }
  0x9e   :  { %116 = vsyncpa [#allocation3], 1 }
  0x9f   :  { %117 = vsyncpa [#allocation5], 1 }

</bundles_post_ra>
